<compile_context>
chip_gen: v7x
topology: tpu7x:2x2x1
jax: 0.10.0
libtpu: 0.0.40
codegen_flags: <defaults>
</compile_context>

<pallas_src>
import functools

import jax
import jax.numpy as jnp
from jax import lax
from jax.experimental import pallas as pl
from jax.experimental.pallas import tpu as pltpu

EPS = 1e-5


def _round_up(x, m):
    return (x + m - 1) // m * m


def _conv_in_relu_kernel(x_ref, w_ref, st_ref, o_ref, *,
                         KH, KW, Wp, lead, pixels, activation):
    """Fused Conv2d(3x3, reflect-pad) + InstanceNorm2d + ReLU for one batch chunk.

    x_ref : (1, C_in, lead + ML + lead) bf16  zero-margined, reflect-padded,
            (n, h, w)-flattened inputs of this chunk.
    w_ref : (KH*KW, C_out, C_in) bf16         one (C_out, C_in) weight slab per tap.
    st_ref: (NB, ML) f32                      per-sample valid-pixel selector (0/1).
    o_ref : (1, C_out, ML)                    output on the padded-flat domain.
    """
    C_out = w_ref.shape[1]
    ML = st_ref.shape[1]

    # --- 3x3 convolution: 9 shifted, accumulating matmuls on the MXU --------
    acc = jnp.zeros((C_out, ML), jnp.float32)
    for kh in range(KH):
        for kw in range(KW):
            shift = (kh - KH // 2) * Wp + (kw - KW // 2)
            xs = x_ref[0, :, pl.ds(lead + shift, ML)]            # (C_in, ML) bf16
            wk = w_ref[kh * KW + kw]                             # (C_out, C_in) bf16
            acc = acc + jnp.dot(wk, xs, preferred_element_type=jnp.float32)

    # --- InstanceNorm2d (affine=False), one-pass masked statistics ----------
    st = st_ref[...]                                             # (NB, ML) 0/1
    nt = (((1,), (1,)), ((), ()))                                # contract lane axes
    sums = lax.dot_general(acc, st, nt, preferred_element_type=jnp.float32)       # (C_out, NB)
    sqs = lax.dot_general(acc * acc, st, nt, preferred_element_type=jnp.float32)  # (C_out, NB)
    inv_p = 1.0 / float(pixels)
    mean = sums * inv_p
    var = jnp.maximum(sqs * inv_p - mean * mean, 0.0)            # biased variance
    inv_std = lax.rsqrt(var + EPS)

    # Broadcast per-(channel, sample) stats back onto the flat lane axis;
    # non-center / padding lanes get 0 and are discarded by the wrapper.
    mean_f = jnp.dot(mean, st, preferred_element_type=jnp.float32)       # (C_out, ML)
    scale_f = jnp.dot(inv_std, st, preferred_element_type=jnp.float32)   # (C_out, ML)

    y = (acc - mean_f) * scale_f
    if activation:
        y = jnp.maximum(y, 0.0)                                  # ReLU
    o_ref[0] = y.astype(o_ref.dtype)


def _chunk_vmem_bytes(nb, HpWp, Wp, C_in, C_out, KH, KW):
    """Rough per-grid-step VMEM footprint (double-buffered blocks + live temps)."""
    ml = _round_up(nb * HpWp, 128)
    lead = (KH // 2) * Wp + (KW // 2)
    mp = ml + 2 * lead
    x_blk = C_in * mp * 2                    # bf16 input block
    o_blk = C_out * ml * 4                   # output block
    st_blk = max(nb, 8) * ml * 4             # selector (sublane-padded)
    w_blk = KH * KW * max(C_out, 8) * 128 * 2
    live = 4 * C_out * ml * 4                # acc / squares / broadcast temporaries
    return 2 * (x_blk + o_blk) + st_blk + w_blk + live


def _pick_batch_chunk(N, HpWp, Wp, C_in, C_out, KH, KW, budget=16 << 20):
    divisors = [d for d in range(1, N + 1) if N % d == 0]
    fits = [d for d in divisors
            if _chunk_vmem_bytes(d, HpWp, Wp, C_in, C_out, KH, KW) <= budget]
    nb = max(fits) if fits else 1
    # v7x has two TensorCores: prefer >=2 "parallel" grid steps, but only if
    # each step keeps a lane-dense (>=512) flattened spatial axis.
    if nb == N and N > 1:
        smaller = [d for d in fits if d < N and d * HpWp >= 512]
        if smaller:
            nb = max(smaller)
    return nb


def gen_conv_block_forward(x, weight, bias=None, *, activation=True):
    """gen_conv_block(TYPE='down') forward: Conv2d(reflect pad) -> InstanceNorm2d -> ReLU.

    x: (N, C_in, H, W); weight: (C_out, C_in, KH, KW); bias: (C_out,) -- accepted
    but unused: a per-channel constant bias cancels exactly in InstanceNorm2d
    (affine=False), so dropping it is a zero-error simplification.
    """
    del bias
    N, C_in, H, W = x.shape
    C_out, C_in_w, KH, KW = weight.shape
    assert C_in_w == C_in and KH % 2 == 1 and KW % 2 == 1
    ph, pw = KH // 2, KW // 2
    Hp, Wp = H + 2 * ph, W + 2 * pw
    HpWp = Hp * Wp
    P = H * W

    NB = _pick_batch_chunk(N, HpWp, Wp, C_in, C_out, KH, KW)
    NC = N // NB
    M = NB * HpWp                        # logical flat length of one chunk
    ML = _round_up(M, 128)               # lane-aligned compute / store width
    lead = ph * Wp + pw                  # margin covering the largest tap shift
    MP = ML + 2 * lead

    # ---- wrapper-side glue (layout only, no im2col duplication) ------------
    xp = jnp.pad(x, ((0, 0), (0, 0), (ph, ph), (pw, pw)), mode="reflect")
    xp = xp.astype(jnp.bfloat16)                              # cast once, not per step
    # (N, C_in, Hp, Wp) -> (NC, C_in, NB*Hp*Wp), then zero margins on the lane axis.
    x_flat = (xp.reshape(NC, NB, C_in, HpWp)
                .transpose(0, 2, 1, 3)
                .reshape(NC, C_in, M))
    x_flat = jnp.pad(x_flat, ((0, 0), (0, 0), (lead, lead + ML - M)))

    # Conv weight as one (C_out, C_in) slab per tap (w_taps[kh*KW+kw, o, c] = weight[o, c, kh, kw]).
    w_taps = weight.transpose(2, 3, 0, 1).reshape(KH * KW, C_out, C_in).astype(jnp.bfloat16)

    # Per-sample valid-pixel selector: st[n, n*HpWp + i*Wp + j] = 1 iff (i, j) is
    # the padded-domain center of an output pixel of sample n.
    q = jnp.arange(HpWp)
    ii, jj = q // Wp, q % Wp
    center = ((ii >= ph) & (ii < ph + H) & (jj >= pw) & (jj < pw + W)).astype(jnp.float32)
    st = (jnp.eye(NB, dtype=jnp.float32)[:, :, None] * center[None, None, :]).reshape(NB, M)
    st = jnp.pad(st, ((0, 0), (0, ML - M)))

    kernel = functools.partial(
        _conv_in_relu_kernel,
        KH=KH, KW=KW, Wp=Wp, lead=lead, pixels=P, activation=activation)

    vmem_bytes = _chunk_vmem_bytes(NB, HpWp, Wp, C_in, C_out, KH, KW)
    vmem_limit = int(min(48 * 2**20, max(8 * 2**20, 4 * vmem_bytes)))

    out = pl.pallas_call(
        kernel,
        out_shape=jax.ShapeDtypeStruct((NC, C_out, ML), x.dtype),
        grid=(NC,),
        in_specs=[
            pl.BlockSpec((1, C_in, MP), lambda g: (g, 0, 0)),
            pl.BlockSpec((KH * KW, C_out, C_in), lambda g: (0, 0, 0)),
            pl.BlockSpec((NB, ML), lambda g: (0, 0)),
        ],
        out_specs=pl.BlockSpec((1, C_out, ML), lambda g: (g, 0, 0)),
        compiler_params=pltpu.CompilerParams(
            dimension_semantics=("parallel",),
            vmem_limit_bytes=vmem_limit),
    )(x_flat, w_taps, st)

    # Compact the padded-flat result back to (N, C_out, H, W).
    out = out[:, :, :M].reshape(NC, C_out, NB, Hp, Wp)
    out = out.transpose(0, 2, 1, 3, 4).reshape(N, C_out, Hp, Wp)
    return out[:, :, ph:ph + H, pw:pw + W]


def _reference(x, weight, bias, *, activation=True):
    KH, KW = weight.shape[2], weight.shape[3]
    xp = jnp.pad(x, ((0, 0), (0, 0), (KH // 2,) * 2, (KW // 2,) * 2), mode="reflect")
    y = lax.conv_general_dilated(
        xp, weight, window_strides=(1, 1), padding="VALID",
        dimension_numbers=("NCHW", "OIHW", "NCHW"))
    y = y + bias[None, :, None, None]
    mean = jnp.mean(y, axis=(2, 3), keepdims=True)
    var = jnp.var(y, axis=(2, 3), keepdims=True)
    y = (y - mean) / jnp.sqrt(var + EPS)
    if activation:
        y = jnp.maximum(y, 0.0)
    return y


if __name__ == "__main__":
    # gen_conv_block(4, 8, TYPE='down', activation=True, kernel_size=3, stride=1, padding=1)
    N, C_in, C_out, H, W = 2, 4, 8, 16, 16
    KH = KW = 3

    key = jax.random.PRNGKey(0)
    kx, kwt, kb = jax.random.split(key, 3)
    x = jax.random.normal(kx, (N, C_in, H, W), dtype=jnp.float32)

    fan_in = C_in * KH * KW
    bound = 1.0 / jnp.sqrt(fan_in)
    weight = jax.random.uniform(kwt, (C_out, C_in, KH, KW), jnp.float32, -bound, bound)
    bias = jax.random.uniform(kb, (C_out,), jnp.float32, -bound, bound)

    out = gen_conv_block_forward(x, weight, bias, activation=True)
    out = jax.block_until_ready(out)

    ref = _reference(x, weight, bias, activation=True)
    assert out.shape == (N, C_out, H, W)
    # Kernel feeds the MXU bf16 inputs (f32 accumulation); tolerance sized accordingly.
    assert jnp.allclose(out, ref, atol=2e-2, rtol=2e-2), "mismatch vs reference"

    # TODO(synk): TYPE='up' (ConvTranspose2d) branch and stride != 1 are not implemented.
    # TODO(synk): very large H*W would additionally need a spatial-tile grid axis with a
    #             two-pass instance norm; the current kernel tiles only the batch.
    print("KERNEL_OK")
</pallas_src>

<mosaic_0001>
module attributes {stable_mosaic.version = 11 : i64} {
  func.func @_conv_in_relu_kernel(%arg0: i32, %arg1: memref<1x4x806xbf16, #tpu.memory_space<vmem>>, %arg2: memref<9x8x4xbf16, #tpu.memory_space<vmem>>, %arg3: memref<2x768xf32, #tpu.memory_space<vmem>>, %arg4: memref<1x8x768xf32, #tpu.memory_space<vmem>>) attributes {dimension_semantics = [#tpu.dimension_semantics<parallel>], iteration_bounds = array<i64: 1>, scalar_prefetch = 0 : i64, scratch_operands = 0 : i64, tpu.core_type = #tpu.core_type<tc>, window_params = [{transform_indices = @transform_0, window_bounds = array<i64: 1, 4, 806>}, {pipeline_mode = #tpu.pipeline_mode<synchronous>, transform_indices = @transform_1, window_bounds = array<i64: 9, 8, 4>}, {pipeline_mode = #tpu.pipeline_mode<synchronous>, transform_indices = @transform_2, window_bounds = array<i64: 2, 768>}, {transform_indices = @transform_3, window_bounds = array<i64: 1, 8, 768>}]} {
    %cst = arith.constant 0.000000e+00 : f32
    %0 = vector.broadcast %cst : f32 to vector<8x768xf32>
    %c0 = arith.constant 0 : index
    %c0_0 = arith.constant 0 : index
    %c0_1 = arith.constant 0 : index
    %1 = vector.load %arg1[%c0, %c0_0, %c0_1] : memref<1x4x806xbf16, #tpu.memory_space<vmem>>, vector<1x4x768xbf16>
    %2 = vector.shape_cast %1 : vector<1x4x768xbf16> to vector<4x768xbf16>
    %c0_2 = arith.constant 0 : index
    %c0_3 = arith.constant 0 : index
    %c0_4 = arith.constant 0 : index
    %3 = vector.load %arg2[%c0_2, %c0_3, %c0_4] : memref<9x8x4xbf16, #tpu.memory_space<vmem>>, vector<1x8x4xbf16>
    %4 = vector.shape_cast %3 : vector<1x8x4xbf16> to vector<8x4xbf16>
    %cst_5 = arith.constant dense<0.000000e+00> : vector<8x768xf32>
    %5 = tpu.matmul %4, %2, %cst_5 {dimension_numbers = #tpu.dot_dimension_numbers<[1], [0], [0], [1], [0, 0, 1, 1], [], []>} : vector<8x4xbf16>, vector<4x768xbf16>, vector<8x768xf32> -> vector<8x768xf32>
    %6 = arith.addf %0, %5 : vector<8x768xf32>
    %c0_6 = arith.constant 0 : index
    %c0_7 = arith.constant 0 : index
    %c1 = arith.constant 1 : index
    %7 = vector.load %arg1[%c0_6, %c0_7, %c1] : memref<1x4x806xbf16, #tpu.memory_space<vmem>>, vector<1x4x768xbf16>
    %8 = vector.shape_cast %7 : vector<1x4x768xbf16> to vector<4x768xbf16>
    %c1_8 = arith.constant 1 : index
    %c0_9 = arith.constant 0 : index
    %c0_10 = arith.constant 0 : index
    %9 = vector.load %arg2[%c1_8, %c0_9, %c0_10] : memref<9x8x4xbf16, #tpu.memory_space<vmem>>, vector<1x8x4xbf16>
    %10 = vector.shape_cast %9 : vector<1x8x4xbf16> to vector<8x4xbf16>
    %cst_11 = arith.constant dense<0.000000e+00> : vector<8x768xf32>
    %11 = tpu.matmul %10, %8, %cst_11 {dimension_numbers = #tpu.dot_dimension_numbers<[1], [0], [0], [1], [0, 0, 1, 1], [], []>} : vector<8x4xbf16>, vector<4x768xbf16>, vector<8x768xf32> -> vector<8x768xf32>
    %12 = arith.addf %6, %11 : vector<8x768xf32>
    %c0_12 = arith.constant 0 : index
    %c0_13 = arith.constant 0 : index
    %c2 = arith.constant 2 : index
    %13 = vector.load %arg1[%c0_12, %c0_13, %c2] : memref<1x4x806xbf16, #tpu.memory_space<vmem>>, vector<1x4x768xbf16>
    %14 = vector.shape_cast %13 : vector<1x4x768xbf16> to vector<4x768xbf16>
    %c2_14 = arith.constant 2 : index
    %c0_15 = arith.constant 0 : index
    %c0_16 = arith.constant 0 : index
    %15 = vector.load %arg2[%c2_14, %c0_15, %c0_16] : memref<9x8x4xbf16, #tpu.memory_space<vmem>>, vector<1x8x4xbf16>
    %16 = vector.shape_cast %15 : vector<1x8x4xbf16> to vector<8x4xbf16>
    %cst_17 = arith.constant dense<0.000000e+00> : vector<8x768xf32>
    %17 = tpu.matmul %16, %14, %cst_17 {dimension_numbers = #tpu.dot_dimension_numbers<[1], [0], [0], [1], [0, 0, 1, 1], [], []>} : vector<8x4xbf16>, vector<4x768xbf16>, vector<8x768xf32> -> vector<8x768xf32>
    %18 = arith.addf %12, %17 : vector<8x768xf32>
    %c0_18 = arith.constant 0 : index
    %c0_19 = arith.constant 0 : index
    %c18 = arith.constant 18 : index
    %19 = vector.load %arg1[%c0_18, %c0_19, %c18] : memref<1x4x806xbf16, #tpu.memory_space<vmem>>, vector<1x4x768xbf16>
    %20 = vector.shape_cast %19 : vector<1x4x768xbf16> to vector<4x768xbf16>
    %c3 = arith.constant 3 : index
    %c0_20 = arith.constant 0 : index
    %c0_21 = arith.constant 0 : index
    %21 = vector.load %arg2[%c3, %c0_20, %c0_21] : memref<9x8x4xbf16, #tpu.memory_space<vmem>>, vector<1x8x4xbf16>
    %22 = vector.shape_cast %21 : vector<1x8x4xbf16> to vector<8x4xbf16>
    %cst_22 = arith.constant dense<0.000000e+00> : vector<8x768xf32>
    %23 = tpu.matmul %22, %20, %cst_22 {dimension_numbers = #tpu.dot_dimension_numbers<[1], [0], [0], [1], [0, 0, 1, 1], [], []>} : vector<8x4xbf16>, vector<4x768xbf16>, vector<8x768xf32> -> vector<8x768xf32>
    %24 = arith.addf %18, %23 : vector<8x768xf32>
    %c0_23 = arith.constant 0 : index
    %c0_24 = arith.constant 0 : index
    %c19 = arith.constant 19 : index
    %25 = vector.load %arg1[%c0_23, %c0_24, %c19] : memref<1x4x806xbf16, #tpu.memory_space<vmem>>, vector<1x4x768xbf16>
    %26 = vector.shape_cast %25 : vector<1x4x768xbf16> to vector<4x768xbf16>
    %c4 = arith.constant 4 : index
    %c0_25 = arith.constant 0 : index
    %c0_26 = arith.constant 0 : index
    %27 = vector.load %arg2[%c4, %c0_25, %c0_26] : memref<9x8x4xbf16, #tpu.memory_space<vmem>>, vector<1x8x4xbf16>
    %28 = vector.shape_cast %27 : vector<1x8x4xbf16> to vector<8x4xbf16>
    %cst_27 = arith.constant dense<0.000000e+00> : vector<8x768xf32>
    %29 = tpu.matmul %28, %26, %cst_27 {dimension_numbers = #tpu.dot_dimension_numbers<[1], [0], [0], [1], [0, 0, 1, 1], [], []>} : vector<8x4xbf16>, vector<4x768xbf16>, vector<8x768xf32> -> vector<8x768xf32>
    %30 = arith.addf %24, %29 : vector<8x768xf32>
    %c0_28 = arith.constant 0 : index
    %c0_29 = arith.constant 0 : index
    %c20 = arith.constant 20 : index
    %31 = vector.load %arg1[%c0_28, %c0_29, %c20] : memref<1x4x806xbf16, #tpu.memory_space<vmem>>, vector<1x4x768xbf16>
    %32 = vector.shape_cast %31 : vector<1x4x768xbf16> to vector<4x768xbf16>
    %c5 = arith.constant 5 : index
    %c0_30 = arith.constant 0 : index
    %c0_31 = arith.constant 0 : index
    %33 = vector.load %arg2[%c5, %c0_30, %c0_31] : memref<9x8x4xbf16, #tpu.memory_space<vmem>>, vector<1x8x4xbf16>
    %34 = vector.shape_cast %33 : vector<1x8x4xbf16> to vector<8x4xbf16>
    %cst_32 = arith.constant dense<0.000000e+00> : vector<8x768xf32>
    %35 = tpu.matmul %34, %32, %cst_32 {dimension_numbers = #tpu.dot_dimension_numbers<[1], [0], [0], [1], [0, 0, 1, 1], [], []>} : vector<8x4xbf16>, vector<4x768xbf16>, vector<8x768xf32> -> vector<8x768xf32>
    %36 = arith.addf %30, %35 : vector<8x768xf32>
    %c0_33 = arith.constant 0 : index
    %c0_34 = arith.constant 0 : index
    %c36 = arith.constant 36 : index
    %37 = vector.load %arg1[%c0_33, %c0_34, %c36] : memref<1x4x806xbf16, #tpu.memory_space<vmem>>, vector<1x4x768xbf16>
    %38 = vector.shape_cast %37 : vector<1x4x768xbf16> to vector<4x768xbf16>
    %c6 = arith.constant 6 : index
    %c0_35 = arith.constant 0 : index
    %c0_36 = arith.constant 0 : index
    %39 = vector.load %arg2[%c6, %c0_35, %c0_36] : memref<9x8x4xbf16, #tpu.memory_space<vmem>>, vector<1x8x4xbf16>
    %40 = vector.shape_cast %39 : vector<1x8x4xbf16> to vector<8x4xbf16>
    %cst_37 = arith.constant dense<0.000000e+00> : vector<8x768xf32>
    %41 = tpu.matmul %40, %38, %cst_37 {dimension_numbers = #tpu.dot_dimension_numbers<[1], [0], [0], [1], [0, 0, 1, 1], [], []>} : vector<8x4xbf16>, vector<4x768xbf16>, vector<8x768xf32> -> vector<8x768xf32>
    %42 = arith.addf %36, %41 : vector<8x768xf32>
    %c0_38 = arith.constant 0 : index
    %c0_39 = arith.constant 0 : index
    %c37 = arith.constant 37 : index
    %43 = vector.load %arg1[%c0_38, %c0_39, %c37] : memref<1x4x806xbf16, #tpu.memory_space<vmem>>, vector<1x4x768xbf16>
    %44 = vector.shape_cast %43 : vector<1x4x768xbf16> to vector<4x768xbf16>
    %c7 = arith.constant 7 : index
    %c0_40 = arith.constant 0 : index
    %c0_41 = arith.constant 0 : index
    %45 = vector.load %arg2[%c7, %c0_40, %c0_41] : memref<9x8x4xbf16, #tpu.memory_space<vmem>>, vector<1x8x4xbf16>
    %46 = vector.shape_cast %45 : vector<1x8x4xbf16> to vector<8x4xbf16>
    %cst_42 = arith.constant dense<0.000000e+00> : vector<8x768xf32>
    %47 = tpu.matmul %46, %44, %cst_42 {dimension_numbers = #tpu.dot_dimension_numbers<[1], [0], [0], [1], [0, 0, 1, 1], [], []>} : vector<8x4xbf16>, vector<4x768xbf16>, vector<8x768xf32> -> vector<8x768xf32>
    %48 = arith.addf %42, %47 : vector<8x768xf32>
    %c0_43 = arith.constant 0 : index
    %c0_44 = arith.constant 0 : index
    %c38 = arith.constant 38 : index
    %49 = vector.load %arg1[%c0_43, %c0_44, %c38] : memref<1x4x806xbf16, #tpu.memory_space<vmem>>, vector<1x4x768xbf16>
    %50 = vector.shape_cast %49 : vector<1x4x768xbf16> to vector<4x768xbf16>
    %c8 = arith.constant 8 : index
    %c0_45 = arith.constant 0 : index
    %c0_46 = arith.constant 0 : index
    %51 = vector.load %arg2[%c8, %c0_45, %c0_46] : memref<9x8x4xbf16, #tpu.memory_space<vmem>>, vector<1x8x4xbf16>
    %52 = vector.shape_cast %51 : vector<1x8x4xbf16> to vector<8x4xbf16>
    %cst_47 = arith.constant dense<0.000000e+00> : vector<8x768xf32>
    %53 = tpu.matmul %52, %50, %cst_47 {dimension_numbers = #tpu.dot_dimension_numbers<[1], [0], [0], [1], [0, 0, 1, 1], [], []>} : vector<8x4xbf16>, vector<4x768xbf16>, vector<8x768xf32> -> vector<8x768xf32>
    %54 = arith.addf %48, %53 : vector<8x768xf32>
    %c0_48 = arith.constant 0 : index
    %c0_49 = arith.constant 0 : index
    %55 = vector.load %arg3[%c0_48, %c0_49] : memref<2x768xf32, #tpu.memory_space<vmem>>, vector<2x768xf32>
    %cst_50 = arith.constant dense<0.000000e+00> : vector<8x2xf32>
    %56 = tpu.matmul %54, %55, %cst_50 {dimension_numbers = #tpu.dot_dimension_numbers<[1], [1], [0], [0], [0, 0, 1, 0], [], []>} : vector<8x768xf32>, vector<2x768xf32>, vector<8x2xf32> -> vector<8x2xf32>
    %57 = arith.mulf %54, %54 : vector<8x768xf32>
    %cst_51 = arith.constant dense<0.000000e+00> : vector<8x2xf32>
    %58 = tpu.matmul %57, %55, %cst_51 {dimension_numbers = #tpu.dot_dimension_numbers<[1], [1], [0], [0], [0, 0, 1, 0], [], []>} : vector<8x768xf32>, vector<2x768xf32>, vector<8x2xf32> -> vector<8x2xf32>
    %cst_52 = arith.constant 3.906250e-03 : f32
    %59 = vector.broadcast %cst_52 : f32 to vector<8x2xf32>
    %60 = arith.mulf %56, %59 : vector<8x2xf32>
    %cst_53 = arith.constant 3.906250e-03 : f32
    %61 = vector.broadcast %cst_53 : f32 to vector<8x2xf32>
    %62 = arith.mulf %58, %61 : vector<8x2xf32>
    %63 = arith.mulf %60, %60 : vector<8x2xf32>
    %64 = arith.subf %62, %63 : vector<8x2xf32>
    %cst_54 = arith.constant 0.000000e+00 : f32
    %65 = vector.broadcast %cst_54 : f32 to vector<8x2xf32>
    %66 = arith.maximumf %64, %65 : vector<8x2xf32>
    %cst_55 = arith.constant 9.99999974E-6 : f32
    %67 = vector.broadcast %cst_55 : f32 to vector<8x2xf32>
    %68 = arith.addf %66, %67 : vector<8x2xf32>
    %69 = math.rsqrt %68 : vector<8x2xf32>
    %cst_56 = arith.constant dense<0.000000e+00> : vector<8x768xf32>
    %70 = tpu.matmul %60, %55, %cst_56 {dimension_numbers = #tpu.dot_dimension_numbers<[1], [0], [0], [1], [0, 0, 1, 1], [], []>} : vector<8x2xf32>, vector<2x768xf32>, vector<8x768xf32> -> vector<8x768xf32>
    %cst_57 = arith.constant dense<0.000000e+00> : vector<8x768xf32>
    %71 = tpu.matmul %69, %55, %cst_57 {dimension_numbers = #tpu.dot_dimension_numbers<[1], [0], [0], [1], [0, 0, 1, 1], [], []>} : vector<8x2xf32>, vector<2x768xf32>, vector<8x768xf32> -> vector<8x768xf32>
    %72 = arith.subf %54, %70 : vector<8x768xf32>
    %73 = arith.mulf %72, %71 : vector<8x768xf32>
    %cst_58 = arith.constant 0.000000e+00 : f32
    %74 = vector.broadcast %cst_58 : f32 to vector<8x768xf32>
    %75 = arith.maximumf %73, %74 : vector<8x768xf32>
    %c0_59 = arith.constant 0 : index
    %c0_60 = arith.constant 0 : index
    %c0_61 = arith.constant 0 : index
    %76 = vector.load %arg4[%c0_59, %c0_60, %c0_61] : memref<1x8x768xf32, #tpu.memory_space<vmem>>, vector<1x8x768xf32>
    %77 = vector.shape_cast %76 : vector<1x8x768xf32> to vector<8x768xf32>
    %78 = vector.shape_cast %75 : vector<8x768xf32> to vector<1x8x768xf32>
    tpu.vector_store %arg4[%c0_59, %c0_60, %c0_61], %78 {strides = array<i32>} : memref<1x8x768xf32, #tpu.memory_space<vmem>>, vector<1x8x768xf32>,
    return
  }
  func.func @transform_0(%arg0: i32) -> (i32, i32, i32) {
    %c0_i32 = arith.constant 0 : i32
    %c0_i32_0 = arith.constant 0 : i32
    %c0_i32_1 = arith.constant 0 : i32
    return %arg0, %c0_i32, %c0_i32_0 : i32, i32, i32
  }
  func.func @transform_1(%arg0: i32) -> (i32, i32, i32) {
    %c0_i32 = arith.constant 0 : i32
    %c0_i32_0 = arith.constant 0 : i32
    %c0_i32_1 = arith.constant 0 : i32
    %c0_i32_2 = arith.constant 0 : i32
    return %c0_i32, %c0_i32_0, %c0_i32_1 : i32, i32, i32
  }
  func.func @transform_2(%arg0: i32) -> (i32, i32) {
    %c0_i32 = arith.constant 0 : i32
    %c0_i32_0 = arith.constant 0 : i32
    %c0_i32_1 = arith.constant 0 : i32
    return %c0_i32, %c0_i32_0 : i32, i32
  }
  func.func @transform_3(%arg0: i32) -> (i32, i32, i32) {
    %c0_i32 = arith.constant 0 : i32
    %c0_i32_0 = arith.constant 0 : i32
    %c0_i32_1 = arith.constant 0 : i32
    return %arg0, %c0_i32, %c0_i32_0 : i32, i32, i32
  }
}

</mosaic_0001>

<bundles_post_ra>
// kernel: tpu_custom_call.1
= control target key start
LH: loop header
LB: loop body
LE: loop exit
PB: predicated region body
PF: predicated region fallthrough
CT: control target
= control target key end

     0   :  { %v28_v1 = vlaneseq  ;;  %v3030_v2 = vmov 1983009808   ;;  %s3474_s0 = inlined_call_operand.vmem [shape: bf16[1,4,806], index: 0, kind: input, shape index: {}]   ;;  %s3475_s1 = inlined_call_operand.vmem [shape: bf16[9,8,4], index: 1, kind: input, shape index: {}]   ;;  %s3476_s2 = inlined_call_operand.vmem [shape: f32[2,768], index: 2, kind: input, shape index: {}]   ;;  %s3477_s3 = inlined_call_operand.hbm [shape: f32[1,8,768], index: 3, kind: output, shape index: {}]  }
   0x1   :  { %v19_v0 = vld [vmem:[%s3474_s0 + $0x8] sm:$0x3f]  ;;  %v26_v3 = vunpack.c.l.s4 %v3030_v2 }
   0x2   :  { %v29_v4 = vshrl.u32 %v28_v1, 7  ;;  %v41_v6 = vcombine.high %v19_v0, %v19_v0 }
   0x3   :  { %v27_v5 = vunpack.c.0.s8 %v26_v3 }
   0x5   :  { %v3065_v7 = vsub.s32 %v27_v5, %v29_v4 }
   0x6   :  { %8 = vsyncpa [#allocation3], 0  ;;  %v377_v8 = vld [vmem:[%s3474_s0] sm:$0xff]  ;;  %v3031_v9 = vmov 0   ;;  %s3032_s16 = smov 127   ;;  %s3033_s17 = smov 126  }
   0x7   :  { %215 = vmatprep.mubr.bf16.mxu0 %v3031_v9  ;;  %133 = vmatprep.mubr.bf16.mxu1 %v3031_v9  ;;  %v48_v10 = vrot.slane %v19_v0, %v3065_v7  ;;  %v55_v11 = vrot.slane %v41_v6, %v3065_v7  ;;  %v3075_v13 = vrot.slane %v377_v8, %v3065_v7  ;;  %v378_v17 = vld [vmem:[%s3474_s0 + $0x8] sm:$0x3f]  ;;  %s3034_s22 = smov 110   ;;  %s3035_s23 = smov 109   ;;  %vm71_vm0 = vcmask 1039360  }
   0x8   :  { %v383_v14 = vcombine.high %v377_v8, %v377_v8  ;;  %v407_v18 = vrot.slane %v378_v17, %v3065_v7  ;;  %v400_v19 = vcombine.high %v378_v17, %v378_v17  ;;  %v588_v23 = vld [vmem:[%s3474_s0 + $0x8] sm:$0x3f]  ;;  %s3036_s28 = smov 108   ;;  %s3037_s4 = smov 92   ;;  %vm82_vm1 = vcmask 1041408  }
   0x9   :  { %65 = vrot.lane.b32.xlu0 %v48_v10, %s3032_s16  ;;  %v56_v12 = vcombine.high %v48_v10, %v48_v10  ;;  %69 = vrot.lane.b32.xlu1 %v55_v11, %s3032_s16  ;;  %v3081_v15 = vcombine.high %v3075_v13, %v3075_v13  ;;  %v617_v24 = vrot.slane %v588_v23, %v3065_v7  ;;  %v798_v28 = vld [vmem:[%s3474_s0 + $0x8] sm:$0x3f]  ;;  %s3038_s5 = smov 91   ;;  %s3039_s8 = smov 90   ;;  %v2798_v61 = vld [vmem:[%s3475_s1 + $0x4] sm:$0xf] }
   0xa   :  { %v3084_v16 = vrot.slane %v383_v14, %v3065_v7  ;;  %v414_v20 = vrot.slane %v400_v19, %v3065_v7  ;;  %v415_v21 = vcombine.high %v407_v18, %v407_v18  ;;  %v610_v26 = vcombine.high %v588_v23, %v588_v23  ;;  %v1008_v33 = vld [vmem:[%s3474_s0 + $0x8] sm:$0x3f]  ;;  %v18_v5 = vld [vmem:[%s3475_s1] sm:$0xf] }
   0xb   :  { %v625_v25 = vcombine.high %v617_v24, %v617_v24  ;;  %v827_v29 = vrot.slane %v798_v28, %v3065_v7  ;;  %v820_v30 = vcombine.high %v798_v28, %v798_v28  ;;  %v1037_v34 = vrot.slane %v1008_v33, %v3065_v7  ;;  %v1218_v38 = vld [vmem:[%s3474_s0 + $0x8] sm:$0x3f] }
   0xc   :  { %v3103_v22 = vcombine.high %v3084_v16, %v3084_v16  ;;  %v624_v27 = vrot.slane %v610_v26, %v3065_v7  ;;  %v1030_v36 = vcombine.high %v1008_v33, %v1008_v33  ;;  %v1247_v39 = vrot.slane %v1218_v38, %v3065_v7  ;;  %v1428_v43 = vld [vmem:[%s3474_s0 + $0x8] sm:$0x3f] }
   0xd   :  { %67 = vrot.lane.b32.xlu0 %v56_v12, %s3032_s16  ;;  %416 = vrot.lane.b32.xlu1 %v3075_v13, %s3033_s17  ;;  %v834_v31 = vrot.slane %v820_v30, %v3065_v7  ;;  %v835_v32 = vcombine.high %v827_v29, %v827_v29  ;;  %v1045_v35 = vcombine.high %v1037_v34, %v1037_v34  ;;  %v1638_v48 = vld [vmem:[%s3474_s0 + $0x8] sm:$0x3f]  ;;  %vm78_vm2 = vcmask 31744  }
   0xe   :  { %v1044_v37 = vrot.slane %v1030_v36, %v3065_v7  ;;  %v1240_v40 = vcombine.high %v1218_v38, %v1218_v38  ;;  %v1255_v41 = vcombine.high %v1247_v39, %v1247_v39  ;;  %v1457_v44 = vrot.slane %v1428_v43, %v3065_v7  ;;  %v2805_v59 = vld.sshfl [vmem:[%s3474_s0 + $0x8] sm:$0x33 pattern:$0x76325410] }
   0xf   :  { %v1450_v45 = vcombine.high %v1428_v43, %v1428_v43  ;;  %v1667_v49 = vrot.slane %v1638_v48, %v3065_v7  ;;  %v1660_v50 = vcombine.high %v1638_v48, %v1638_v48  ;;  %v237_v0 = vsel %vm82_vm1, %v3075_v13, 0  ;;  %v2812_v30 = vld [vmem:[%s3475_s1 + $0x8] sm:$0xf] }
  0x10   :  { %v1254_v42 = vrot.slane %v1240_v40, %v3065_v7  ;;  %v1465_v46 = vcombine.high %v1457_v44, %v1457_v44  ;;  %v232_v1 = vcombine.high %v2805_v59, %v2805_v59  ;;  %vm430_vm3 = vcmask 1031168  }
  0x11   :  { %418 = vrot.lane.b32.xlu0 %v3081_v15, %s3033_s17  ;;  %420 = vrot.lane.b32.xlu1 %v3084_v16, %s3033_s17  ;;  %v1464_v47 = vrot.slane %v1450_v45, %v3065_v7  ;;  %v1675_v51 = vcombine.high %v1667_v49, %v1667_v49  ;;  %v1674_v52 = vrot.slane %v1660_v50, %v3065_v7  ;;  %v249_v11 = vsel %vm82_vm1, %v2805_v59, 0 }
  0x12   :  { %v243_v28 = vsel %vm82_vm1, %v3084_v16, 0  ;;  %vm640_vm4 = vcmask 900096   ;;  %vm850_vm5 = vcmask 891904   ;;  %vm1060_vm6 = vcmask 883712  }
  0x13   :  { %vm1270_vm7 = vcmask 752640   ;;  %vm1480_vm8 = vcmask 744448   ;;  %vm1690_vm9 = vcmask 736256   ;;  %vm2315_vm10 = vcmask 15360  }
  0x15   :  { %57 = vrot.lane.b32.xlu0 %v3075_v13, %s3032_s16  ;;  %59 = vrot.lane.b32.xlu1 %v3081_v15, %s3032_s16 }
  0x19   :  { %424 = vrot.lane.b32.xlu1 %v407_v18, %s3033_s17  ;;  %61 = vrot.lane.b32.xlu0 %v3084_v16, %s3032_s16 }
  0x1d   :  { %428 = vrot.lane.b32.xlu1 %v414_v20, %s3033_s17  ;;  %426 = vrot.lane.b32.xlu0 %v415_v21, %s3033_s17 }
  0x21   :  { %626 = vrot.lane.b32.xlu1 %v3075_v13, %s3034_s22  ;;  %63 = vrot.lane.b32.xlu0 %v3103_v22, %s3032_s16 }
  0x25   :  { %630 = vrot.lane.b32.xlu1 %v3084_v16, %s3034_s22  ;;  %628 = vrot.lane.b32.xlu0 %v3081_v15, %s3034_s22 }
  0x29   :  { %636 = vrot.lane.b32.xlu1 %v625_v25, %s3034_s22  ;;  %634 = vrot.lane.b32.xlu0 %v617_v24, %s3034_s22 }
  0x2d   :  { %836 = vrot.lane.b32.xlu1 %v3075_v13, %s3035_s23  ;;  %638 = vrot.lane.b32.xlu0 %v624_v27, %s3034_s22 }
  0x31   :  { %840 = vrot.lane.b32.xlu1 %v3084_v16, %s3035_s23  ;;  %838 = vrot.lane.b32.xlu0 %v3081_v15, %s3035_s23 }
  0x35   :  { %844 = vrot.lane.b32.xlu1 %v827_v29, %s3035_s23  ;;  %422 = vrot.lane.b32.xlu0 %v3103_v22, %s3033_s17 }
  0x39   :  { %848 = vrot.lane.b32.xlu1 %v834_v31, %s3035_s23  ;;  %846 = vrot.lane.b32.xlu0 %v835_v32, %s3035_s23 }
  0x3d   :  { %1046 = vrot.lane.b32.xlu1 %v3075_v13, %s3036_s28  ;;  %632 = vrot.lane.b32.xlu0 %v3103_v22, %s3034_s22 }
  0x41   :  { %1050 = vrot.lane.b32.xlu1 %v3084_v16, %s3036_s28  ;;  %1048 = vrot.lane.b32.xlu0 %v3081_v15, %s3036_s28 }
  0x45   :  { %1056 = vrot.lane.b32.xlu1 %v1045_v35, %s3036_s28  ;;  %1054 = vrot.lane.b32.xlu0 %v1037_v34, %s3036_s28 }
  0x49   :  { %842 = vrot.lane.b32.xlu1 %v3103_v22, %s3035_s23  ;;  %1058 = vrot.lane.b32.xlu0 %v1044_v37, %s3036_s28 }
  0x4d   :  { %1258 = vrot.lane.b32.xlu1 %v3081_v15, %s3037_s4  ;;  %1256 = vrot.lane.b32.xlu0 %v3075_v13, %s3037_s4 }
  0x51   :  { %1052 = vrot.lane.b32.xlu1 %v3103_v22, %s3036_s28  ;;  %1260 = vrot.lane.b32.xlu0 %v3084_v16, %s3037_s4 }
  0x55   :  { %1264 = vrot.lane.b32.xlu0 %v1247_v39, %s3037_s4  ;;  %1266 = vrot.lane.b32.xlu1 %v1255_v41, %s3037_s4 }
  0x59   :  { %1268 = vrot.lane.b32.xlu0 %v1254_v42, %s3037_s4  ;;  %1466 = vrot.lane.b32.xlu1 %v3075_v13, %s3038_s5 }
  0x5d   :  { %1468 = vrot.lane.b32.xlu0 %v3081_v15, %s3038_s5  ;;  %1470 = vrot.lane.b32.xlu1 %v3084_v16, %s3038_s5 }
  0x61   :  { %1262 = vrot.lane.b32.xlu0 %v3103_v22, %s3037_s4  ;;  %1474 = vrot.lane.b32.xlu1 %v1457_v44, %s3038_s5 }
  0x65   :  { %1476 = vrot.lane.b32.xlu0 %v1465_v46, %s3038_s5  ;;  %1478 = vrot.lane.b32.xlu1 %v1464_v47, %s3038_s5  ;;  %v2819_v46 = vld [vmem:[%s3475_s1 + $0xc] sm:$0xf] }
  0x69   :  { %1472 = vrot.lane.b32.xlu0 %v3103_v22, %s3038_s5  ;;  %1676 = vrot.lane.b32.xlu1 %v3075_v13, %s3039_s8 }
  0x6d   :  { %1680 = vrot.lane.b32.xlu1 %v3084_v16, %s3039_s8  ;;  %1678 = vrot.lane.b32.xlu0 %v3081_v15, %s3039_s8 }
  0x71   :  { %1684 = vrot.lane.b32.xlu1 %v1667_v49, %s3039_s8  ;;  %1682 = vrot.lane.b32.xlu0 %v3103_v22, %s3039_s8 }
  0x75   :  { %1686 = vrot.lane.b32.xlu0 %v1675_v51, %s3039_s8  ;;  %1688 = vrot.lane.b32.xlu1 %v1674_v52, %s3039_s8 }
  0x7b   :  { %v66_v53 = vpop.permute.xlu0 %65  ;;  %v70_v54 = vpop.permute.xlu1 %69 }
  0x7f   :  { %v68_v55 = vpop.permute.xlu0 %67  ;;  %v417_v56 = vpop.permute.xlu1 %416 }
  0x80   :  { %v77_v57 = vsel %vm71_vm0, %v68_v55, %v70_v54  ;;  %v76_v58 = vsel %vm71_vm0, %v66_v53, %v68_v55 }
  0x81   :  { %2803 = vmatprep.subr.msk.bf16.mxu0 %vm82_vm1, %v77_v57  ;;  %v96_v60 = vsel %vm82_vm1, %v76_v58, 0 }
  0x82   :  { %184 = vmatpush1.bf16.msra.mxu0 %v96_v60 }
  0x83   :  { %v419_v62 = vpop.permute.xlu0 %418  ;;  %v3172_v63 = vpop.permute.xlu1 %420  ;;  %2806 = vmatprep.subr.msk.bf16.mxu0 %vm82_vm1, %v3081_v15 }
  0x84   :  { %v432_v12 = vsel %vm430_vm3, %v419_v62, %v3172_v63  ;;  %v431_v17 = vsel %vm430_vm3, %v417_v56, %v419_v62 }
  0x85   :  { %2804 = vmatmul.mubr.msk.bf16.vlgmr.msra.gmra.mrb[0].mxu0 %vm78_vm2, %v2798_v61  ;;  %v441_v24 = vsel %vm82_vm1, %v431_v17, 0 }
  0x86   :  { %255 = vmatpush1.bf16.msra.mxu0 %v237_v0  ;;  %286 = vmatprep.mubr.bf16.mxu0 %v3031_v9  ;;  %v2826_v0 = vld [vmem:[%s3475_s1 + $0x10] sm:$0xf] }
  0x87   :  { %v58_v2 = vpop.permute.xlu0 %57  ;;  %v60_v3 = vpop.permute.xlu1 %59  ;;  %2810 = vmatprep.subr.msk.bf16.mxu0 %vm82_vm1, %v232_v1 }
  0x88   :  { %v72_v4 = vsel %vm71_vm0, %v58_v2, %v60_v3 }
  0x89   :  { %v84_v10 = vsel %vm82_vm1, %v72_v4, 0 }
  0x8b   :  { %v3185_v6 = vpop.permute.xlu1 %424  ;;  %v62_v8 = vpop.permute.xlu0 %61 }
  0x8c   :  { %v73_v13 = vsel %vm71_vm0, %v60_v3, %v62_v8 }
  0x8d   :  { %2799 = vmatprep.subr.msk.bf16.mxu1 %vm82_vm1, %v73_v13  ;;  %2807 = vmatmul.mubr.msk.bf16.vlgmr.msra.gmra.mrb[4].mxu0 %vm78_vm2, %v18_v5 }
  0x8e   :  { %102 = vmatpush1.bf16.msra.mxu1 %v84_v10  ;;  %337 = vmatpush1.bf16.msra.mxu0 %v249_v11 }
  0x8f   :  { %v429_v14 = vpop.permute.xlu1 %428  ;;  %2813 = vmatprep.subr.msk.bf16.mxu0 %vm82_vm1, %v432_v12  ;;  %v427_v15 = vpop.permute.xlu0 %426  ;;  %368 = vmatprep.mubr.bf16.mxu0 %v3031_v9 }
  0x90   :  { %v436_v20 = vsel %vm430_vm3, %v427_v15, %v429_v14  ;;  %v435_v29 = vsel %vm430_vm3, %v3185_v6, %v427_v15 }
  0x91   :  { %2800 = vmatmul.mubr.msk.bf16.vlgmr.msra.gmra.mrb[0].mxu1 %vm78_vm2, %v2798_v61  ;;  %v453_v31 = vsel %vm82_vm1, %v435_v29, 0 }
  0x92   :  { %174 = vmatprep.mubr.bf16.mxu1 %v3031_v9 }
  0x93   :  { %v627_v18 = vpop.permute.xlu1 %626  ;;  %v64_v19 = vpop.permute.xlu0 %63 }
  0x94   :  { %v74_v21 = vsel %vm71_vm0, %v62_v8, %v64_v19  ;;  %v75_v23 = vsel %vm71_vm0, %v64_v19, %v66_v53 }
  0x95   :  { %v90_v25 = vsel %vm82_vm1, %v74_v21, 0  ;;  %2801 = vmatprep.subr.msk.bf16.mxu1 %vm82_vm1, %v75_v23  ;;  %2811 = vmatmul.mubr.msk.bf16.vlgmr.msra.gmra.mrb[0].mxu0 %vm78_vm2, %v18_v5 }
  0x96   :  { %459 = vmatpush1.bf16.msra.mxu0 %v441_v24  ;;  %143 = vmatpush1.bf16.msra.mxu1 %v90_v25  ;;  %v2833_v25 = vld [vmem:[%s3475_s1 + $0x14] sm:$0xf] }
  0x97   :  { %v631_v26 = vpop.permute.xlu1 %630  ;;  %v629_v27 = vpop.permute.xlu0 %628  ;;  %2817 = vmatprep.subr.msk.bf16.mxu0 %vm82_vm1, %v436_v20  ;;  %490 = vmatprep.mubr.bf16.mxu0 %v3031_v9 }
  0x98   :  { %2808 = vmatprep.subr.msk.bf16.mxu1 %vm82_vm1, %v3103_v22  ;;  %v642_v33 = vsel %vm640_vm4, %v629_v27, %v631_v26  ;;  %v641_v35 = vsel %vm640_vm4, %v627_v18, %v629_v27 }
  0x99   :  { %2802 = vmatmul.mubr.msk.bf16.vlgmr.msra.gmra.mrb[4].mxu1 %vm78_vm2, %v2798_v61  ;;  %v651_v36 = vsel %vm82_vm1, %v641_v35, 0 }
  0x9a   :  { %296 = vmatpush1.bf16.msra.mxu1 %v243_v28  ;;  %327 = vmatprep.mubr.bf16.mxu1 %v3031_v9 }
  0x9b   :  { %v637_v32 = vpop.permute.xlu1 %636  ;;  %v635_v16 = vpop.permute.xlu0 %634 }
  0x9c   :  { %v645_v42 = vsel %vm640_vm4, %v635_v16, %v637_v32 }
  0x9d   :  { %2814 = vmatmul.mubr.msk.bf16.vlgmr.msra.gmra.mrb[4].mxu0 %vm78_vm2, %v2812_v30  ;;  %v663_v47 = vsel %vm82_vm1, %v645_v42, 0 }
  0x9e   :  { %541 = vmatpush1.bf16.msra.mxu0 %v453_v31  ;;  %572 = vmatprep.mubr.bf16.mxu0 %v3031_v9 }
  0x9f   :  { %v837_v22 = vpop.permute.xlu1 %836  ;;  %v639_v34 = vpop.permute.xlu0 %638  ;;  %2820 = vmatprep.subr.msk.bf16.mxu0 %vm82_vm1, %v642_v33 }
  0xa0   :  { %v646_v39 = vsel %vm640_vm4, %v637_v32, %v639_v34 }
  0xa3   :  { %v841_v37 = vpop.permute.xlu1 %840  ;;  %v839_v38 = vpop.permute.xlu0 %838 }
  0xa4   :  { %v852_v50 = vsel %vm850_vm5, %v839_v38, %v841_v37  ;;  %v851_v53 = vsel %vm850_vm5, %v837_v22, %v839_v38 }
  0xa5   :  { %2809 = vmatmul.mubr.msk.bf16.vlgmr.msra.gmra.mrb[4].mxu1 %vm78_vm2, %v18_v5  ;;  %2818 = vmatmul.mubr.msk.bf16.vlgmr.msra.gmra.mrb[0].mxu0 %vm78_vm2, %v2812_v30  ;;  %v861_v57 = vsel %vm82_vm1, %v851_v53, 0 }
  0xa6   :  { %669 = vmatpush1.bf16.msra.mxu0 %v651_v36  ;;  %700 = vmatprep.mubr.bf16.mxu0 %v3031_v9 }
  0xa7   :  { %v845_v40 = vpop.permute.xlu1 %844  ;;  %v423_v41 = vpop.permute.xlu0 %422  ;;  %2824 = vmatprep.subr.msk.bf16.mxu0 %vm82_vm1, %v646_v39  ;;  %531 = vmatprep.mubr.bf16.mxu1 %v3031_v9 }
  0xa8   :  { %v433_v43 = vsel %vm430_vm3, %v3172_v63, %v423_v41  ;;  %v434_v44 = vsel %vm430_vm3, %v423_v41, %v3185_v6  ;;  %v2840_v41 = vld [vmem:[%s3475_s1 + $0x18] sm:$0xf] }
  0xa9   :  { %v447_v45 = vsel %vm82_vm1, %v433_v43, 0  ;;  %2815 = vmatprep.subr.msk.bf16.mxu1 %vm82_vm1, %v434_v44 }
  0xaa   :  { %500 = vmatpush1.bf16.msra.mxu1 %v447_v45 }
  0xab   :  { %v849_v48 = vpop.permute.xlu1 %848  ;;  %v847_v49 = vpop.permute.xlu0 %846 }
  0xac   :  { %v856_v60 = vsel %vm850_vm5, %v847_v49, %v849_v48  ;;  %v855_v63 = vsel %vm850_vm5, %v845_v40, %v847_v49 }
  0xad   :  { %2821 = vmatmul.mubr.msk.bf16.vlgmr.msra.gmra.mrb[4].mxu0 %vm78_vm2, %v2819_v46  ;;  %v873_v1 = vsel %vm82_vm1, %v855_v63, 0 }
  0xae   :  { %751 = vmatpush1.bf16.msra.mxu0 %v663_v47  ;;  %782 = vmatprep.mubr.bf16.mxu0 %v3031_v9 }
  0xaf   :  { %v1047_v51 = vpop.permute.xlu1 %1046  ;;  %2827 = vmatprep.subr.msk.bf16.mxu0 %vm82_vm1, %v852_v50  ;;  %v633_v52 = vpop.permute.xlu0 %632 }
  0xb0   :  { %v643_v54 = vsel %vm640_vm4, %v631_v26, %v633_v52  ;;  %v644_v55 = vsel %vm640_vm4, %v633_v52, %v635_v16 }
  0xb1   :  { %v657_v56 = vsel %vm82_vm1, %v643_v54, 0  ;;  %2816 = vmatmul.mubr.msk.bf16.vlgmr.msra.gmra.mrb[4].mxu1 %vm78_vm2, %v2812_v30  ;;  %2822 = vmatprep.subr.msk.bf16.mxu1 %vm82_vm1, %v644_v55 }
  0xb2   :  { %710 = vmatpush1.bf16.msra.mxu1 %v657_v56  ;;  %741 = vmatprep.mubr.bf16.mxu1 %v3031_v9 }
  0xb3   :  { %v1051_v58 = vpop.permute.xlu1 %1050  ;;  %v1049_v59 = vpop.permute.xlu0 %1048 }
  0xb4   :  { %v1062_v4 = vsel %vm1060_vm6, %v1049_v59, %v1051_v58  ;;  %v1061_v12 = vsel %vm1060_vm6, %v1047_v51, %v1049_v59  ;;  %v2847_v59 = vld [vmem:[%s3475_s1 + $0x1c] sm:$0xf] }
  0xb5   :  { %2825 = vmatmul.mubr.msk.bf16.vlgmr.msra.gmra.mrb[0].mxu0 %vm78_vm2, %v2819_v46  ;;  %v1071_v13 = vsel %vm82_vm1, %v1061_v12, 0 }
  0xb6   :  { %879 = vmatpush1.bf16.msra.mxu0 %v861_v57  ;;  %910 = vmatprep.mubr.bf16.mxu0 %v3031_v9 }
  0xb7   :  { %v1057_v61 = vpop.permute.xlu1 %1056  ;;  %v1055_v62 = vpop.permute.xlu0 %1054  ;;  %2831 = vmatprep.subr.msk.bf16.mxu0 %vm82_vm1, %v856_v60 }
  0xb8   :  { %v1065_v24 = vsel %vm1060_vm6, %v1055_v62, %v1057_v61 }
  0xb9   :  { %v1083_v26 = vsel %vm82_vm1, %v1065_v24, 0 }
  0xbb   :  { %v843_v2 = vpop.permute.xlu1 %842  ;;  %v1059_v3 = vpop.permute.xlu0 %1058 }
  0xbc   :  { %v853_v5 = vsel %vm850_vm5, %v841_v37, %v843_v2  ;;  %v854_v6 = vsel %vm850_vm5, %v843_v2, %v845_v40  ;;  %v1066_v17 = vsel %vm1060_vm6, %v1057_v61, %v1059_v3 }
  0xbd   :  { %v867_v8 = vsel %vm82_vm1, %v853_v5, 0  ;;  %2823 = vmatmul.mubr.msk.bf16.vlgmr.msra.gmra.mrb[4].mxu1 %vm78_vm2, %v2819_v46  ;;  %2828 = vmatmul.mubr.msk.bf16.vlgmr.msra.gmra.mrb[4].mxu0 %vm78_vm2, %v2826_v0 }
  0xbe   :  { %2829 = vmatprep.subr.msk.bf16.mxu1 %vm82_vm1, %v854_v6  ;;  %961 = vmatpush1.bf16.msra.mxu0 %v873_v1 }
  0xbf   :  { %920 = vmatpush1.bf16.msra.mxu1 %v867_v8  ;;  %v1259_v10 = vpop.permute.xlu1 %1258  ;;  %v1257_v11 = vpop.permute.xlu0 %1256  ;;  %2834 = vmatprep.subr.msk.bf16.mxu0 %vm82_vm1, %v1062_v4  ;;  %v2854_v4 = vld [vmem:[%s3475_s1 + $0x20] sm:$0xf] }
  0xc0   :  { %992 = vmatprep.mubr.bf16.mxu0 %v3031_v9  ;;  %951 = vmatprep.mubr.bf16.mxu1 %v3031_v9  ;;  %v1271_v32 = vsel %vm1270_vm7, %v1257_v11, %v1259_v10  ;;  %v1847_v8 = vld [vmem:[%s3476_s2] sm:$0xff] }
  0xc1   :  { %v1281_v16 = vsel %vm82_vm1, %v1271_v32, 0  ;;  %v1851_v12 = vcombine.high %v1847_v8, %v1847_v8 }
  0xc3   :  { %v1053_v14 = vpop.permute.xlu1 %1052  ;;  %v1261_v15 = vpop.permute.xlu0 %1260 }
  0xc4   :  { %v1063_v18 = vsel %vm1060_vm6, %v1051_v58, %v1053_v14  ;;  %v1064_v19 = vsel %vm1060_vm6, %v1053_v14, %v1055_v62  ;;  %v1272_v29 = vsel %vm1270_vm7, %v1259_v10, %v1261_v15  ;;  %v3362_v10 = vrot.slane %v1847_v8, %v3065_v7 }
  0xc5   :  { %2832 = vmatmul.mubr.msk.bf16.vlgmr.msra.gmra.mrb[0].mxu0 %vm78_vm2, %v2826_v0  ;;  %2836 = vmatprep.subr.msk.bf16.mxu1 %vm82_vm1, %v1064_v19  ;;  %v1077_v20 = vsel %vm82_vm1, %v1063_v18, 0 }
  0xc6   :  { %1089 = vmatpush1.bf16.msra.mxu0 %v1071_v13  ;;  %1120 = vmatprep.mubr.bf16.mxu0 %v3031_v9  ;;  %v3366_v11 = vcombine.high %v3362_v10, %v3362_v10 }
  0xc7   :  { %2838 = vmatprep.subr.msk.bf16.mxu0 %vm82_vm1, %v1066_v17  ;;  %v1265_v21 = vpop.permute.xlu0 %1264  ;;  %v1267_v23 = vpop.permute.xlu1 %1266 }
  0xc8   :  { %v1275_v40 = vsel %vm1270_vm7, %v1265_v21, %v1267_v23 }
  0xc9   :  { %2830 = vmatmul.mubr.msk.bf16.vlgmr.msra.gmra.mrb[4].mxu1 %vm78_vm2, %v2826_v0  ;;  %v1293_v42 = vsel %vm82_vm1, %v1275_v40, 0 }
  0xca   :  { %1130 = vmatpush1.bf16.msra.mxu1 %v1077_v20  ;;  %1161 = vmatprep.mubr.bf16.mxu1 %v3031_v9 }
  0xcb   :  { %v1269_v27 = vpop.permute.xlu0 %1268  ;;  %v1467_v28 = vpop.permute.xlu1 %1466 }
  0xcc   :  { %v1276_v36 = vsel %vm1270_vm7, %v1267_v23, %v1269_v27 }
  0xcd   :  { %2835 = vmatmul.mubr.msk.bf16.vlgmr.msra.gmra.mrb[4].mxu0 %vm78_vm2, %v2833_v25 }
  0xce   :  { %1171 = vmatpush1.bf16.msra.mxu0 %v1083_v26  ;;  %1202 = vmatprep.mubr.bf16.mxu0 %v3031_v9 }
  0xcf   :  { %v1469_v30 = vpop.permute.xlu0 %1468  ;;  %2841 = vmatprep.subr.msk.bf16.mxu0 %vm82_vm1, %v1272_v29  ;;  %v1471_v31 = vpop.permute.xlu1 %1470 }
  0xd0   :  { %v1482_v45 = vsel %vm1480_vm8, %v1469_v30, %v1471_v31  ;;  %v1481_v51 = vsel %vm1480_vm8, %v1467_v28, %v1469_v30 }
  0xd1   :  { %v1491_v52 = vsel %vm82_vm1, %v1481_v51, 0 }
  0xd3   :  { %v1263_v33 = vpop.permute.xlu0 %1262  ;;  %v1475_v22 = vpop.permute.xlu1 %1474 }
  0xd4   :  { %v1273_v34 = vsel %vm1270_vm7, %v1261_v15, %v1263_v33  ;;  %v1274_v35 = vsel %vm1270_vm7, %v1263_v33, %v1265_v21 }
  0xd5   :  { %v1287_v37 = vsel %vm82_vm1, %v1273_v34, 0  ;;  %2837 = vmatmul.mubr.msk.bf16.vlgmr.msra.gmra.mrb[4].mxu1 %vm78_vm2, %v2833_v25  ;;  %2839 = vmatmul.mubr.msk.bf16.vlgmr.msra.gmra.mrb[0].mxu0 %vm78_vm2, %v2833_v25 }
  0xd6   :  { %1299 = vmatpush1.bf16.msra.mxu0 %v1281_v16  ;;  %2843 = vmatprep.subr.msk.bf16.mxu1 %vm82_vm1, %v1274_v35 }
  0xd7   :  { %1340 = vmatpush1.bf16.msra.mxu1 %v1287_v37  ;;  %2845 = vmatprep.subr.msk.bf16.mxu0 %vm82_vm1, %v1276_v36  ;;  %v1477_v38 = vpop.permute.xlu0 %1476  ;;  %v1479_v39 = vpop.permute.xlu1 %1478 }
  0xd8   :  { %1330 = vmatprep.mubr.bf16.mxu0 %v3031_v9  ;;  %1371 = vmatprep.mubr.bf16.mxu1 %v3031_v9  ;;  %v1486_v55 = vsel %vm1480_vm8, %v1477_v38, %v1479_v39  ;;  %v1485_v57 = vsel %vm1480_vm8, %v1475_v22, %v1477_v38  ;;  %v3040_v39 = vmov 0.0  }
  0xd9   :  { %v1503_v60 = vsel %vm82_vm1, %v1485_v57, 0 }
  0xdb   :  { %v1473_v43 = vpop.permute.xlu0 %1472  ;;  %v1677_v44 = vpop.permute.xlu1 %1676 }
  0xdc   :  { %v1483_v46 = vsel %vm1480_vm8, %v1471_v31, %v1473_v43  ;;  %v1484_v47 = vsel %vm1480_vm8, %v1473_v43, %v1475_v22 }
  0xdd   :  { %2842 = vmatmul.mubr.msk.bf16.vlgmr.msra.gmra.mrb[4].mxu0 %vm78_vm2, %v2840_v41  ;;  %2850 = vmatprep.subr.msk.bf16.mxu1 %vm82_vm1, %v1484_v47  ;;  %v1497_v48 = vsel %vm82_vm1, %v1483_v46, 0 }
  0xde   :  { %1381 = vmatpush1.bf16.msra.mxu0 %v1293_v42  ;;  %1412 = vmatprep.mubr.bf16.mxu0 %v3031_v9 }
  0xdf   :  { %2848 = vmatprep.subr.msk.bf16.mxu0 %vm82_vm1, %v1482_v45  ;;  %v1681_v49 = vpop.permute.xlu1 %1680  ;;  %v1679_v50 = vpop.permute.xlu0 %1678 }
  0xe0   :  { %v1692_v61 = vsel %vm1690_vm9, %v1679_v50, %v1681_v49  ;;  %v1691_v63 = vsel %vm1690_vm9, %v1677_v44, %v1679_v50 }
  0xe1   :  { %2844 = vmatmul.mubr.msk.bf16.vlgmr.msra.gmra.mrb[4].mxu1 %vm78_vm2, %v2840_v41  ;;  %v1701_v2 = vsel %vm82_vm1, %v1691_v63, 0 }
  0xe2   :  { %1550 = vmatpush1.bf16.msra.mxu1 %v1497_v48  ;;  %1581 = vmatprep.mubr.bf16.mxu1 %v3031_v9 }
  0xe3   :  { %v1685_v53 = vpop.permute.xlu1 %1684  ;;  %v1683_v54 = vpop.permute.xlu0 %1682 }
  0xe4   :  { %v1694_v56 = vsel %vm1690_vm9, %v1683_v54, %v1685_v53  ;;  %v1693_v58 = vsel %vm1690_vm9, %v1681_v49, %v1683_v54 }
  0xe5   :  { %2846 = vmatmul.mubr.msk.bf16.vlgmr.msra.gmra.mrb[0].mxu0 %vm78_vm2, %v2840_v41  ;;  %2857 = vmatprep.subr.msk.bf16.mxu1 %vm82_vm1, %v1694_v56  ;;  %v1707_v62 = vsel %vm82_vm1, %v1693_v58, 0 }
  0xe6   :  { %1509 = vmatpush1.bf16.msra.mxu0 %v1491_v52  ;;  %1540 = vmatprep.mubr.bf16.mxu0 %v3031_v9 }
  0xe7   :  { %2852 = vmatprep.subr.msk.bf16.mxu0 %vm82_vm1, %v1486_v55  ;;  %v1687_v0 = vpop.permute.xlu0 %1686  ;;  %v1689_v1 = vpop.permute.xlu1 %1688 }
  0xe8   :  { %v1696_v3 = vsel %vm1690_vm9, %v1687_v0, %v1689_v1  ;;  %v1695_v5 = vsel %vm1690_vm9, %v1685_v53, %v1687_v0 }
  0xe9   :  { %v1713_v6 = vsel %vm82_vm1, %v1695_v5, 0 }
  0xed   :  { %2849 = vmatmul.mubr.msk.bf16.vlgmr.msra.gmra.mrb[4].mxu0 %vm78_vm2, %v2847_v59  ;;  %2851 = vmatmul.mubr.msk.bf16.vlgmr.msra.gmra.mrb[4].mxu1 %vm78_vm2, %v2847_v59 }
  0xee   :  { %1591 = vmatpush1.bf16.msra.mxu0 %v1503_v60  ;;  %1622 = vmatprep.mubr.bf16.mxu0 %v3031_v9 }
  0xef   :  { %2855 = vmatprep.subr.msk.bf16.mxu0 %vm82_vm1, %v1692_v61  ;;  %1760 = vmatpush1.bf16.msra.mxu1 %v1707_v62 }
  0xf0   :  { %1791 = vmatprep.mubr.bf16.mxu1 %v3031_v9  ;;  %1882 = vmatprep.subr.mxu1 %v3366_v11 }
  0xf5   :  { %2853 = vmatmul.mubr.msk.bf16.vlgmr.msra.gmra.mrb[0].mxu0 %vm78_vm2, %v2847_v59 }
  0xf6   :  { %1719 = vmatpush1.bf16.msra.mxu0 %v1701_v2  ;;  %1750 = vmatprep.mubr.bf16.mxu0 %v3031_v9 }
  0xf7   :  { %2859 = vmatprep.subr.msk.bf16.mxu0 %vm82_vm1, %v1696_v3 }
  0xf9   :  { %2858 = vmatmul.mubr.msk.bf16.vlgmr.msra.gmra.mrb[4].mxu1 %vm78_vm2, %v2854_v4 }
  0xfa   :  { %1883 = vmatpush1.xpose.msra.mxu1 %v3362_v10 }
  0xfd   :  { %2856 = vmatmul.mubr.msk.bf16.vlgmr.msra.gmra.mrb[4].mxu0 %vm78_vm2, %v2854_v4 }
  0xfe   :  { %1801 = vmatpush1.bf16.msra.mxu0 %v1713_v6  ;;  %1832 = vmatprep.mubr.bf16.mxu0 %v3031_v9  ;;  %v3371_v9 = vrot.slane %v1851_v12, %v3065_v7  ;;  %v3385_v7 = vld.sshfl [vmem:[%s3476_s2 + $0x8] sm:$0x33 pattern:$0x76325410]  ;;  %s3041_s2 = smov [#allocation2]  }
  0xff   :  { %v3393_v30 = vcombine.high %v3385_v7, %v3385_v7  ;;  %s2790_s6 = sshll.u32 %s3041_s2, 4  ;;  %s2791_s6 = int_to_ptr.vmem [resolvable:$true] %s2790_s6 }
 0x100   :  { %v3375_v13 = vcombine.high %v3371_v9, %v3371_v9  ;;  %s3006_s7 = scalar_lea.vmem %s2791_s6, 768  ;;  %p3011_p1 = scmp.lt.s32.totalorder %s2791_s6, %s2791_s6 }
 0x101   :  { %p3007_p0 = scmp.ne.s32.totalorder %s2791_s6, %s3006_s7  ;;  %p3012_p2 = scmp.lt.s32.totalorder %s3006_s7, %s3006_s7 }
 0x102   :  { %1952 = vmatprep.subr.mxu1 %v3375_v13 }
 0x103   :  { %p3013_p3 = por %p3012_p2, %p3011_p1 }
 0x105   :  { %2860 = vmatmul.mubr.msk.bf16.vlgmr.msra.gmra.mrb[0].mxu0 %vm78_vm2, %v2854_v4  ;;  %p3014_p4 = pnand %p3013_p3, %p3007_p0 }
 0x164   :  { %v135_v14 = vpop.f32.mrb[0].mxu1 }
 0x165   :  { %v137_v15 = vpop.f32.mrb[1].mxu1 }
 0x166   :  { %v139_v17 = vpop.f32.mrb[2].mxu1 }
 0x167   :  { %v140_v18 = vpop.f32.mrb[3].mxu1 }
 0x1cc   :  { %v3378_v19 = vpop.f32.mrb[4].mxu1 }
 0x1cd   :  { %v3380_v20 = vpop.f32.mrb[5].mxu1  ;;  %v2094_v36 = vmul.f32 %v3378_v19, %v3378_v19 }
 0x1ce   :  { %v1797_v21 = vpop.f32.mrb[6].mxu1  ;;  %v2095_v35 = vmul.f32 %v3380_v20, %v3380_v20 }
 0x1cf   :  { %v1798_v23 = vpop.f32.mrb[7].mxu1 }
 0x1d0   :  { %v1752_v24 = vpop.f32.mrb[4].mxu0 }
 0x1d1   :  { %v3387_v25 = vadd.f32 %v1752_v24, %v135_v14  ;;  %v1754_v26 = vpop.f32.mrb[5].mxu0 }
 0x1d2   :  { %v3389_v27 = vadd.f32 %v1754_v26, %v137_v15  ;;  %v1756_v28 = vpop.f32.mrb[6].mxu0 }
 0x1d3   :  { %v1757_v29 = vpop.f32.mrb[7].mxu0  ;;  %v2092_v34 = vmul.f32 %v3387_v25, %v3387_v25 }
 0x1d4   :  { %1946 = vmatprep.mubr.f32.mxu1 %v3389_v27  ;;  %v2093_v22 = vmul.f32 %v3389_v27, %v3389_v27 }
 0x1d5   :  { %1947 = vmatmul.mubr.f32.vlgmr.msra.gmra.mrb[8].mxu1 %v3387_v25 }
 0x1d6   :  { %1953 = vmatpush1.xpose.msra.mxu1 %v3371_v9  ;;  %2016 = vmatprep.mubr.f32.mxu1 %v3380_v20 }
 0x1d7   :  { %2022 = vmatprep.subr.mxu1 %v3393_v30 }
 0x1d8   :  { %v3400_v31 = vpop.f32.mrb[0].mxu0 }
 0x1d9   :  { %v3402_v32 = vpop.f32.mrb[1].mxu0  ;;  %v2096_v38 = vmul.f32 %v3400_v31, %v3400_v31 }
 0x1da   :  { %v1838_v16 = vpop.f32.mrb[2].mxu0  ;;  %v2097_v37 = vmul.f32 %v3402_v32, %v3402_v32 }
 0x1db   :  { %v1839_v33 = vpop.f32.mrb[3].mxu0 }
 0x1dd   :  { %2017 = vmatmul.mubr.f32.vlgmr.msra.gmra.mrb[8].mxu1 %v3378_v19 }
 0x1de   :  { %2023 = vmatpush1.xpose.msra.mxu1 %v3385_v7  ;;  %2086 = vmatprep.mubr.f32.mxu1 %v3402_v32 }
 0x1df   :  { %2098 = vmatprep.subr.mxu1 %v3366_v11 }
 0x1e5   :  { %2087 = vmatmul.mubr.f32.vlgmr.msra.gmra.mrb[8].mxu1 %v3400_v31 }
 0x1e6   :  { %2099 = vmatpush1.xpose.msra.mxu1 %v3362_v10  ;;  %2162 = vmatprep.mubr.f32.mxu1 %v2093_v22 }
 0x1e7   :  { %2168 = vmatprep.subr.mxu1 %v3375_v13 }
 0x1e9   :  { %2163 = vmatmul.mubr.f32.vlgmr.msra.gmra.mrb[10].mxu1 %v2092_v34 }
 0x1ea   :  { %2169 = vmatpush1.xpose.msra.mxu1 %v3371_v9  ;;  %2232 = vmatprep.mubr.f32.mxu1 %v2095_v35 }
 0x1eb   :  { %2238 = vmatprep.subr.mxu1 %v3393_v30 }
 0x1f1   :  { %2233 = vmatmul.mubr.f32.vlgmr.msra.gmra.mrb[10].mxu1 %v2094_v36 }
 0x1f2   :  { %2239 = vmatpush1.xpose.msra.mxu1 %v3385_v7  ;;  %2302 = vmatprep.mubr.f32.mxu1 %v2097_v37 }
 0x1f3   :  { %2862 = vmatprep.subr.msk.mxu1 %vm82_vm1, %v3366_v11 }
 0x1f9   :  { %2303 = vmatmul.mubr.f32.vlgmr.msra.gmra.mrb[10].mxu1 %v2096_v38 }
 0x1fa   :  { %2863 = vmatpush1.msk.msra.mxu1 %vm82_vm1, %v3362_v10  ;;  %2395 = vmatprep.mubr.f32.mxu1 %v3040_v39 }
 0x1fb   :  { %2865 = vmatprep.subr.msk.mxu1 %vm82_vm1, %v3375_v13 }
 0x2b8   :  { %v2088_v40 = vpop.f32.mrb[8].mxu1 }
 0x2b9   :  { %v2308_v41 = vmul.f32 0.00390625, %v2088_v40  ;;  %v2090_v42 = vpop.f32.mrb[9].mxu1 }
 0x2bb   :  { %2864 = vmatmul.mubr.msk.f32.vlgmr.msra.gmra.mrb[12].mxu1 %vm2315_vm10, %v2308_v41  ;;  %v2310_v45 = vmul.f32 %v2308_v41, %v2308_v41 }
 0x2bc   :  { %2866 = vmatpush1.msk.msra.mxu1 %vm82_vm1, %v3371_v9  ;;  %2466 = vmatprep.mubr.f32.mxu1 %v3040_v39 }
 0x2bd   :  { %2868 = vmatprep.subr.msk.mxu1 %vm82_vm1, %v3393_v30 }
 0x2bf   :  { %2867 = vmatmul.mubr.msk.f32.vlgmr.msra.gmra.mrb[14].mxu1 %vm2315_vm10, %v2308_v41 }
 0x2c0   :  { %2869 = vmatpush1.msk.msra.mxu1 %vm82_vm1, %v3385_v7  ;;  %2537 = vmatprep.mubr.f32.mxu1 %v3040_v39 }
 0x2c1   :  { %2871 = vmatprep.subr.msk.mxu1 %vm82_vm1, %v3366_v11 }
 0x2c3   :  { %2870 = vmatmul.mubr.msk.f32.vlgmr.msra.gmra.mrb[16].mxu1 %vm2315_vm10, %v2308_v41 }
 0x2c4   :  { %2872 = vmatpush1.msk.msra.mxu1 %vm82_vm1, %v3362_v10  ;;  %2611 = vmatprep.mubr.f32.mxu1 %v3040_v39 }
 0x2c5   :  { %2874 = vmatprep.subr.msk.mxu1 %vm82_vm1, %v3375_v13 }
 0x2cc   :  { %v2304_v43 = vpop.f32.mrb[10].mxu1 }
 0x2cd   :  { %v2309_v44 = vmul.f32 0.00390625, %v2304_v43  ;;  %v2306_v46 = vpop.f32.mrb[11].mxu1 }
 0x2cf   :  { %v2311_v47 = vsub.f32 %v2309_v44, %v2310_v45 }
 0x2d1   :  { %v2312_v48 = vmax.f32 %v2311_v47, 0.0 }
 0x2d3   :  { %v2313_v49 = vadd.f32 1e-05, %v2312_v48 }
 0x2d5   :  { %3004 = vrsqrt.f32 %v2313_v49 }
 0x2df   :  { %v3005_v50 = vpop.eup %3004 }
 0x2e0   :  { %2873 = vmatmul.mubr.msk.f32.vlgmr.msra.gmra.mrb[18].mxu1 %vm2315_vm10, %v3005_v50 }
 0x2e1   :  { %2875 = vmatpush1.msk.msra.mxu1 %vm82_vm1, %v3371_v9  ;;  %2682 = vmatprep.mubr.f32.mxu1 %v3040_v39 }
 0x2e2   :  { %2877 = vmatprep.subr.msk.mxu1 %vm82_vm1, %v3393_v30 }
 0x2e4   :  { %2876 = vmatmul.mubr.msk.f32.vlgmr.msra.gmra.mrb[20].mxu1 %vm2315_vm10, %v3005_v50 }
 0x2e5   :  { %2878 = vmatpush1.msk.msra.mxu1 %vm82_vm1, %v3385_v7  ;;  %2753 = vmatprep.mubr.f32.mxu1 %v3040_v39 }
 0x2e8   :  { %2879 = vmatmul.mubr.msk.f32.vlgmr.msra.gmra.mrb[22].mxu1 %vm2315_vm10, %v3005_v50 }
 0x38e   :  { %v2397_v51 = vpop.f32.mrb[12].mxu1 }
 0x38f   :  { %v2399_v52 = vpop.f32.mrb[13].mxu1  ;;  %v2760_v61 = vsub.f32 %v3387_v25, %v2397_v51 }
 0x390   :  { %v2761_v62 = vsub.f32 %v3389_v27, %v2399_v52 }
 0x392   :  { %v2468_v53 = vpop.f32.mrb[14].mxu1 }
 0x393   :  { %v2762_v54 = vsub.f32 %v3378_v19, %v2468_v53  ;;  %v2470_v55 = vpop.f32.mrb[15].mxu1 }
 0x394   :  { %v2763_v56 = vsub.f32 %v3380_v20, %v2470_v55 }
 0x396   :  { %v2539_v57 = vpop.f32.mrb[16].mxu1 }
 0x397   :  { %v2764_v58 = vsub.f32 %v3400_v31, %v2539_v57  ;;  %v2541_v59 = vpop.f32.mrb[17].mxu1 }
 0x398   :  { %v2765_v60 = vsub.f32 %v3402_v32, %v2541_v59 }
 0x3b3   :  { %v2613_v63 = vpop.f32.mrb[18].mxu1 }
 0x3b4   :  { %v2766_v0 = vmul.f32 %v2760_v61, %v2613_v63  ;;  %v2615_v1 = vpop.f32.mrb[19].mxu1 }
 0x3b5   :  { %v2767_v2 = vmul.f32 %v2761_v62, %v2615_v1 }
 0x3b6   :  { %v2772_v3 = vmax.f32 %v2766_v0, 0.0 }
 0x3b7   :  { %v2773_v4 = vmax.f32 %v2767_v2, 0.0  ;;  %v2684_v5 = vpop.f32.mrb[20].mxu1 }
 0x3b8   :  { %2778 = vst [vmem:[#allocation2] sm:$0xff] %v2772_v3  ;;  %v2768_v6 = vmul.f32 %v2762_v54, %v2684_v5  ;;  %v2686_v8 = vpop.f32.mrb[21].mxu1 }
 0x3b9   :  { %2779 = vst [vmem:[#allocation2 + $0x8] sm:$0xff] %v2773_v4  ;;  %v2769_v10 = vmul.f32 %v2763_v56, %v2686_v8 }
 0x3ba   :  { %v2774_v11 = vmax.f32 %v2768_v6, 0.0 }
 0x3bb   :  { %v2775_v12 = vmax.f32 %v2769_v10, 0.0  ;;  %v2755_v9 = vpop.f32.mrb[22].mxu1 }
 0x3bc   :  { %2780 = vst [vmem:[#allocation2 + $0x10] sm:$0xff] %v2774_v11  ;;  %v2770_v13 = vmul.f32 %v2764_v58, %v2755_v9  ;;  %v2757_v14 = vpop.f32.mrb[23].mxu1 }
 0x3bd   :  { %2781 = vst [vmem:[#allocation2 + $0x18] sm:$0xff] %v2775_v12  ;;  %v2771_v15 = vmul.f32 %v2765_v60, %v2757_v14 }
 0x3be   :  { %v2776_v17 = vmax.f32 %v2770_v13, 0.0 }
 0x3bf   :  { %v2777_v18 = vmax.f32 %v2771_v15, 0.0 }
 0x3c0   :  { %2782 = vst [vmem:[#allocation2 + $0x20] sm:$0xff] %v2776_v17 }
 0x3c1   :  { %2783 = vst [vmem:[#allocation2 + $0x28] sm:$0xff] %v2777_v18 }
 0x3c2   :  { %3017 = shalt.err (!%p3014_p4)
}
 0x3c3   :  { %s3018_s10 = scalar_lea.hbm %s3477_s3, 768 }
 0x3c4   :  { %p3019_p5 = scmp.ne.s32.totalorder %s3477_s3, %s3018_s10  ;;  %p3022_p6 = scmp.lt.u32.totalorder %s3018_s10, %s3477_s3 }
 0x3c6   :  { %p3024_p7 = pnand %p3022_p6, %p3019_p5 }
 0x3c8   :  { %3027 = shalt.err (!%p3024_p7)
}
 0x3c9   :  { %2793 = dma.vmem_to_hbm [thread:$0]  %s2791_s6, 768, %s3477_s3, [#allocation3]  }
 0x3ca   :  { %3028 = dma.done.wait [#allocation3], 768  }
 0x3cb   :  { %3029 = vsyncadd [#allocation3], 4294966528 }
 0x3cc   :  { %2797 = vsyncpa [#allocation3], 1 }

</bundles_post_ra>
